<compile_context>
chip_gen: v7x
topology: tpu7x:2x2x1
jax: 0.10.0
libtpu: 0.0.40
codegen_flags: <defaults>
</compile_context>

<pallas_src>
import functools

import jax
import jax.numpy as jnp
from jax.experimental import pallas as pl
from jax.experimental.pallas import tpu as pltpu

REGIME_DIM = 8
N_HEADS = 4
_LANE = 128
# Max batch columns per grid step.  ~0.5 KiB of VMEM per column (double
# buffered x/out blocks + intermediates) -> 16K columns ~ 9 MiB, inside every
# generation's default scoped VMEM, while amortizing ~0.35 us/step overhead.
_DEFAULT_TB_MAX = 16384


def _cdiv(a, b):
    return (a + b - 1) // b


def _round_up(x, m):
    return _cdiv(x, m) * m


def _choose_tile_b(batch, tb_max):
    """Lane-aligned batch tile: <= tb_max, minimal padding, and an even >=2
    step grid whenever the batch can feed both v7x TensorCores."""
    n_steps = _cdiv(batch, tb_max)
    if batch >= 2 * _LANE:
        n_steps = max(n_steps, 2)      # let "parallel" shard across 2 TCs
    if n_steps > 1 and n_steps % 2:
        n_steps += 1                   # even step count -> balanced cores
    return _round_up(_cdiv(batch, n_steps), _LANE)


def _regime_kernel(x_ref, w1_ref, w2_ref, wo_ref, b_ref, out_ref, *, d):
    # x_ref : [D, TILE_B]          (batch on the 128-lane axis)
    # w1_ref: [2D, D]  w2_ref: [D, 2D]  wo_ref: [2D, D]   (PyTorch [out, in])
    # b_ref : [5D, 1]  fused biases = [b1 (2D); b2 (D); bo (2D)]
    # out   : [4D, TILE_B] slab = [features (2D); importance (D); weighted (D)]
    x = x_ref[...]
    w1 = w1_ref[...]
    w2 = w2_ref[...]
    wo = wo_ref[...]

    b1 = b_ref[0:2 * d, :]          # [2D, 1]
    b2 = b_ref[2 * d:3 * d, :]      # [D, 1]
    bo = b_ref[3 * d:5 * d, :]      # [2D, 1]

    # importance_proj: Linear(D, 2D) -> ReLU -> Linear(2D, D) -> Sigmoid
    h = jnp.dot(w1, x, preferred_element_type=jnp.float32) + b1      # [2D, TB]
    h = jnp.maximum(h, 0.0)
    imp = jax.nn.sigmoid(
        jnp.dot(w2, h, preferred_element_type=jnp.float32) + b2)     # [D, TB]

    # element-wise gating + output_proj: Linear(D, 2D)
    wreg = x * imp                                                    # [D, TB]
    feat = jnp.dot(wo, wreg, preferred_element_type=jnp.float32) + bo  # [2D,TB]

    # Fused, lane-dense output slab (sublane sub-ranges 8-aligned for f32).
    out_ref[0:2 * d, :] = feat.astype(out_ref.dtype)
    out_ref[2 * d:3 * d, :] = imp.astype(out_ref.dtype)
    out_ref[3 * d:4 * d, :] = wreg.astype(out_ref.dtype)


def regime_attention_analyzer(x, params, *, tb_max=_DEFAULT_TB_MAX,
                              out_dtype=jnp.float32):
    """x: [B, D] float32 -> (features [B, 2D], attention_info dict)."""
    B, D = x.shape
    assert D == REGIME_DIM

    tile_b = _choose_tile_b(B, tb_max)
    grid = (_cdiv(B, tile_b),)

    # Batch goes on the lane axis.  No explicit padding: Pallas clamps the
    # edge-block input DMA and masks the edge-block writeback, and the wrapper
    # never reads past column B.
    # TODO(synk): this x.T and the three .T slices below are wrapper-side XLA
    # transposes (extra HBM round trips).  Consumers able to take the
    # [rows, B] slab directly should consume `out` as-is (~2x less traffic).
    x_t = x.T                                                        # [D, B]

    # Fuse the three tiny bias vectors into one column to cut DMA streams.
    b_all = jnp.concatenate(
        [params["b1"].reshape(2 * D, 1),
         params["b2"].reshape(D, 1),
         params["bo"].reshape(2 * D, 1)], axis=0)                    # [5D, 1]

    # Explicit VMEM budget: double-buffered x/out blocks + in-kernel temps
    # (h, imp, wreg, feat = 6D rows), plus slack for weights/biases.
    blk_bytes = (D + 4 * D) * tile_b * 4
    interm_bytes = 6 * D * tile_b * 4
    vmem_limit = int(min(48 * 1024 * 1024,
                         max(16 * 1024 * 1024,
                             2 * blk_bytes + interm_bytes + (1 << 20))))

    cost = pl.CostEstimate(
        flops=6 * (2 * D) * D * B,                 # three tiny matmuls
        transcendentals=3 * D * B,                 # sigmoid exps (+ slack)
        bytes_accessed=(D + 4 * D) * 4 * B)        # memory-bound custom call

    out = pl.pallas_call(
        functools.partial(_regime_kernel, d=D),
        out_shape=jax.ShapeDtypeStruct((4 * D, B), out_dtype),
        grid=grid,
        in_specs=[
            pl.BlockSpec((D, tile_b), lambda i: (0, i)),       # x (moves)
            pl.BlockSpec((2 * D, D), lambda i: (0, 0)),        # w1 (resident)
            pl.BlockSpec((D, 2 * D), lambda i: (0, 0)),        # w2 (resident)
            pl.BlockSpec((2 * D, D), lambda i: (0, 0)),        # wo (resident)
            pl.BlockSpec((5 * D, 1), lambda i: (0, 0)),        # biases (resident)
        ],
        out_specs=pl.BlockSpec((4 * D, tile_b), lambda i: (0, i)),
        compiler_params=pltpu.CompilerParams(
            dimension_semantics=("parallel",),
            vmem_limit_bytes=vmem_limit),
        cost_estimate=cost,
    )(x_t, params["w1"], params["w2"], params["wo"], b_all)

    features = out[0:2 * D, :].T                                     # [B, 2D]
    importance = out[2 * D:3 * D, :].T                               # [B, D]
    weighted = out[3 * D:4 * D, :].T                                 # [B, D]

    # nn.MultiheadAttention over a length-1 sequence (batch_first=True,
    # average_attn_weights=True default): softmax over one key == 1.0, so the
    # returned attention weights are exactly ones of shape [B, 1, 1]; the
    # attended tensor is never returned by the module.  Compile-time constant.
    attention_weights = jnp.ones((B, 1, 1), out_dtype)

    attention_info = {
        "attention_weights": attention_weights,
        "component_importance": importance,
        "weighted_regime": weighted,
    }
    return features, attention_info


def init_params(key, regime_dim=REGIME_DIM):
    """PyTorch-Linear-style init; weights in [out_features, in_features]."""
    d = regime_dim
    k1, k2, k3 = jax.random.split(key, 3)

    def linear(k, fan_in, fan_out):
        kw, kb = jax.random.split(k)
        bound = 1.0 / jnp.sqrt(jnp.float32(fan_in))
        w = jax.random.uniform(kw, (fan_out, fan_in), jnp.float32, -bound, bound)
        b = jax.random.uniform(kb, (fan_out,), jnp.float32, -bound, bound)
        return w, b

    w1, b1 = linear(k1, d, 2 * d)        # importance_proj[0]
    w2, b2 = linear(k2, 2 * d, d)        # importance_proj[2]
    wo, bo = linear(k3, d, 2 * d)        # output_proj
    # TODO(synk): nn.MultiheadAttention QKV/out_proj (and dropout) params are
    # omitted — with seq_len == 1 they provably do not influence any returned
    # tensor (attended is not returned; attn weights are identically 1).
    return {"w1": w1, "b1": b1, "w2": w2, "b2": b2, "wo": wo, "bo": bo}


def _reference(x, p):
    h = jnp.maximum(x @ p["w1"].T + p["b1"], 0.0)
    imp = jax.nn.sigmoid(h @ p["w2"].T + p["b2"])
    wreg = x * imp
    feat = wreg @ p["wo"].T + p["bo"]
    return feat, imp, wreg


def _check(x, params, **kw):
    feat, info = regime_attention_analyzer(x, params, **kw)
    jax.block_until_ready((feat, info))
    ref_feat, ref_imp, ref_wreg = _reference(x, params)
    assert jnp.allclose(feat, ref_feat, atol=1e-5, rtol=1e-5)
    assert jnp.allclose(info["component_importance"], ref_imp, atol=1e-5, rtol=1e-5)
    assert jnp.allclose(info["weighted_regime"], ref_wreg, atol=1e-5, rtol=1e-5)
    assert info["attention_weights"].shape == (x.shape[0], 1, 1)
    assert jnp.allclose(info["attention_weights"],
                        jnp.ones((x.shape[0], 1, 1), jnp.float32))


if __name__ == "__main__":
    key = jax.random.PRNGKey(0)
    k_x, k_x2, k_p = jax.random.split(key, 3)
    params = init_params(k_p)

    # Small primary check (batch=2, regime_dim=8): single 128-lane tile with a
    # masked edge block and no explicit padding.
    x_small = jax.random.normal(k_x, (2, REGIME_DIM), dtype=jnp.float32)
    _check(x_small, params)

    # Multi-step "parallel" grid + non-multiple edge block (B=300 -> tile 256,
    # grid 2), and a forced-small-tile variant (tile 128, grid 3).
    x_big = jax.random.normal(k_x2, (300, REGIME_DIM), dtype=jnp.float32)
    _check(x_big, params)
    _check(x_big, params, tb_max=128)

    print("KERNEL_OK")
</pallas_src>

<mosaic_0001>
module attributes {stable_mosaic.version = 11 : i64} {
  func.func @_regime_kernel(%arg0: i32, %arg1: memref<8x128xf32, #tpu.memory_space<vmem>>, %arg2: memref<16x8xf32, #tpu.memory_space<vmem>>, %arg3: memref<8x16xf32, #tpu.memory_space<vmem>>, %arg4: memref<16x8xf32, #tpu.memory_space<vmem>>, %arg5: memref<40x1xf32, #tpu.memory_space<vmem>>, %arg6: memref<32x128xf32, #tpu.memory_space<vmem>>) attributes {dimension_semantics = [#tpu.dimension_semantics<parallel>], iteration_bounds = array<i64: 1>, scalar_prefetch = 0 : i64, scratch_operands = 0 : i64, tpu.core_type = #tpu.core_type<tc>, window_params = [{transform_indices = @transform_0, window_bounds = array<i64: 8, 128>}, {pipeline_mode = #tpu.pipeline_mode<synchronous>, transform_indices = @transform_1, window_bounds = array<i64: 16, 8>}, {pipeline_mode = #tpu.pipeline_mode<synchronous>, transform_indices = @transform_2, window_bounds = array<i64: 8, 16>}, {pipeline_mode = #tpu.pipeline_mode<synchronous>, transform_indices = @transform_3, window_bounds = array<i64: 16, 8>}, {pipeline_mode = #tpu.pipeline_mode<synchronous>, transform_indices = @transform_4, window_bounds = array<i64: 40, 1>}, {transform_indices = @transform_5, window_bounds = array<i64: 32, 128>}]} {
    %c0 = arith.constant 0 : index
    %c0_0 = arith.constant 0 : index
    %0 = vector.load %arg1[%c0, %c0_0] : memref<8x128xf32, #tpu.memory_space<vmem>>, vector<8x128xf32>
    %c0_1 = arith.constant 0 : index
    %c0_2 = arith.constant 0 : index
    %1 = vector.load %arg2[%c0_1, %c0_2] : memref<16x8xf32, #tpu.memory_space<vmem>>, vector<16x8xf32>
    %c0_3 = arith.constant 0 : index
    %c0_4 = arith.constant 0 : index
    %2 = vector.load %arg3[%c0_3, %c0_4] : memref<8x16xf32, #tpu.memory_space<vmem>>, vector<8x16xf32>
    %c0_5 = arith.constant 0 : index
    %c0_6 = arith.constant 0 : index
    %3 = vector.load %arg4[%c0_5, %c0_6] : memref<16x8xf32, #tpu.memory_space<vmem>>, vector<16x8xf32>
    %c0_7 = arith.constant 0 : index
    %c0_8 = arith.constant 0 : index
    %4 = vector.load %arg5[%c0_7, %c0_8] : memref<40x1xf32, #tpu.memory_space<vmem>>, vector<16x1xf32>
    %c16 = arith.constant 16 : index
    %c0_9 = arith.constant 0 : index
    %5 = vector.load %arg5[%c16, %c0_9] : memref<40x1xf32, #tpu.memory_space<vmem>>, vector<8x1xf32>
    %c24 = arith.constant 24 : index
    %c0_10 = arith.constant 0 : index
    %6 = vector.load %arg5[%c24, %c0_10] : memref<40x1xf32, #tpu.memory_space<vmem>>, vector<16x1xf32>
    %cst = arith.constant dense<0.000000e+00> : vector<16x128xf32>
    %7 = tpu.matmul %1, %0, %cst {dimension_numbers = #tpu.dot_dimension_numbers<[1], [0], [0], [1], [0, 0, 1, 1], [], []>} : vector<16x8xf32>, vector<8x128xf32>, vector<16x128xf32> -> vector<16x128xf32>
    %8 = vector.broadcast %4 : vector<16x1xf32> to vector<16x128xf32>
    %9 = arith.addf %7, %8 : vector<16x128xf32>
    %cst_11 = arith.constant 0.000000e+00 : f32
    %10 = vector.broadcast %cst_11 : f32 to vector<16x128xf32>
    %11 = arith.maximumf %9, %10 : vector<16x128xf32>
    %cst_12 = arith.constant dense<0.000000e+00> : vector<8x128xf32>
    %12 = tpu.matmul %2, %11, %cst_12 {dimension_numbers = #tpu.dot_dimension_numbers<[1], [0], [0], [1], [0, 0, 1, 1], [], []>} : vector<8x16xf32>, vector<16x128xf32>, vector<8x128xf32> -> vector<8x128xf32>
    %13 = vector.broadcast %5 : vector<8x1xf32> to vector<8x128xf32>
    %14 = arith.addf %12, %13 : vector<8x128xf32>
    %15 = arith.negf %14 : vector<8x128xf32>
    %16 = math.exp %15 : vector<8x128xf32>
    %cst_13 = arith.constant 1.000000e+00 : f32
    %17 = vector.broadcast %cst_13 : f32 to vector<8x128xf32>
    %18 = arith.addf %17, %16 : vector<8x128xf32>
    %19 = arith.divf %17, %18 : vector<8x128xf32>
    %20 = arith.mulf %0, %19 : vector<8x128xf32>
    %cst_14 = arith.constant dense<0.000000e+00> : vector<16x128xf32>
    %21 = tpu.matmul %3, %20, %cst_14 {dimension_numbers = #tpu.dot_dimension_numbers<[1], [0], [0], [1], [0, 0, 1, 1], [], []>} : vector<16x8xf32>, vector<8x128xf32>, vector<16x128xf32> -> vector<16x128xf32>
    %22 = vector.broadcast %6 : vector<16x1xf32> to vector<16x128xf32>
    %23 = arith.addf %21, %22 : vector<16x128xf32>
    %c0_15 = arith.constant 0 : index
    %c0_16 = arith.constant 0 : index
    %24 = vector.load %arg6[%c0_15, %c0_16] : memref<32x128xf32, #tpu.memory_space<vmem>>, vector<16x128xf32>
    tpu.vector_store %arg6[%c0_15, %c0_16], %23 {strides = array<i32>} : memref<32x128xf32, #tpu.memory_space<vmem>>, vector<16x128xf32>,
    %c16_17 = arith.constant 16 : index
    %c0_18 = arith.constant 0 : index
    %25 = vector.load %arg6[%c16_17, %c0_18] : memref<32x128xf32, #tpu.memory_space<vmem>>, vector<8x128xf32>
    tpu.vector_store %arg6[%c16_17, %c0_18], %19 {strides = array<i32>} : memref<32x128xf32, #tpu.memory_space<vmem>>, vector<8x128xf32>,
    %c24_19 = arith.constant 24 : index
    %c0_20 = arith.constant 0 : index
    %26 = vector.load %arg6[%c24_19, %c0_20] : memref<32x128xf32, #tpu.memory_space<vmem>>, vector<8x128xf32>
    tpu.vector_store %arg6[%c24_19, %c0_20], %20 {strides = array<i32>} : memref<32x128xf32, #tpu.memory_space<vmem>>, vector<8x128xf32>,
    return
  }
  func.func @transform_0(%arg0: i32) -> (i32, i32) {
    %c0_i32 = arith.constant 0 : i32
    %c0_i32_0 = arith.constant 0 : i32
    return %c0_i32, %arg0 : i32, i32
  }
  func.func @transform_1(%arg0: i32) -> (i32, i32) {
    %c0_i32 = arith.constant 0 : i32
    %c0_i32_0 = arith.constant 0 : i32
    %c0_i32_1 = arith.constant 0 : i32
    return %c0_i32, %c0_i32_0 : i32, i32
  }
  func.func @transform_2(%arg0: i32) -> (i32, i32) {
    %c0_i32 = arith.constant 0 : i32
    %c0_i32_0 = arith.constant 0 : i32
    %c0_i32_1 = arith.constant 0 : i32
    return %c0_i32, %c0_i32_0 : i32, i32
  }
  func.func @transform_3(%arg0: i32) -> (i32, i32) {
    %c0_i32 = arith.constant 0 : i32
    %c0_i32_0 = arith.constant 0 : i32
    %c0_i32_1 = arith.constant 0 : i32
    return %c0_i32, %c0_i32_0 : i32, i32
  }
  func.func @transform_4(%arg0: i32) -> (i32, i32) {
    %c0_i32 = arith.constant 0 : i32
    %c0_i32_0 = arith.constant 0 : i32
    %c0_i32_1 = arith.constant 0 : i32
    return %c0_i32, %c0_i32_0 : i32, i32
  }
  func.func @transform_5(%arg0: i32) -> (i32, i32) {
    %c0_i32 = arith.constant 0 : i32
    %c0_i32_0 = arith.constant 0 : i32
    return %c0_i32, %arg0 : i32, i32
  }
}

</mosaic_0001>

<bundles_post_ra>
// kernel: tpu_custom_call.1
= control target key start
LH: loop header
LB: loop body
LE: loop exit
PB: predicated region body
PF: predicated region fallthrough
CT: control target
= control target key end

     0   :  { %vm41_vm0 = vcmask 64512   ;;  %v355_v3 = vmov 0   ;;  %v356_v7 = vmov 0.0|0.0   ;;  %vm357_vm1 = vmmov 0   ;;  %s438_s0 = inlined_call_operand.vmem [shape: f32[8,2], index: 0, kind: input, shape index: {}]   ;;  %s439_s1 = inlined_call_operand.vmem [shape: f32[16,8], index: 1, kind: input, shape index: {}]   ;;  %s440_s4 = inlined_call_operand.vmem [shape: f32[40,1], index: 4, kind: input, shape index: {}]   ;;  %s441_s2 = inlined_call_operand.vmem [shape: f32[8,16], index: 2, kind: input, shape index: {}]   ;;  %s442_s3 = inlined_call_operand.vmem [shape: f32[16,8], index: 3, kind: input, shape index: {}]   ;;  %s443_s5 = inlined_call_operand.vmem [shape: f32[32,2], index: 5, kind: output, shape index: {}]  }
   0x1   :  { %v20_v0 = vld [vmem:[%s438_s0] sm:$0xff]  ;;  %v22_v2 = vld [vmem:[%s439_s1 + $0x8] sm:$0xff]  ;;  %349 = vset.pattern.permute.xlu0 %v355_v3  ;;  %350 = vset.pattern.permute.xlu1 %v355_v3  ;;  %v358_v8 = vmov 0.0   ;;  %v28_v9 = vld [vmem:[%s440_s4 + $0x10] sm:$0xff]  ;;  %vm130_vm2 = vcmask 130048  }
   0x2   :  { %v21_v1 = vld [vmem:[%s439_s1] sm:$0xff]  ;;  %325 = vmatprep.subr.mxu0 %v20_v0  ;;  %v27_v5 = vld [vmem:[%s440_s4 + $0x8] sm:$0xff]  ;;  %342 = vmatprep.subr.bf16.mxu1 %v356_v7  ;;  %v29_v10 = vld [vmem:[%s440_s4 + $0x18] sm:$0xff] }
   0x3   :  { %327 = vmatprep.mubr.msk.f32.mxu0 %vm41_vm0, %v21_v1  ;;  %v26_v4 = vld [vmem:[%s440_s4] sm:$0xff]  ;;  %326 = vmatpush3.msra.mxu0 %v20_v0  ;;  %v25_v31 = vld [vmem:[%s442_s3 + $0x8] sm:$0xff] }
   0x4   :  { %33 = vperm.xlu0 %349, %v26_v4   ;;  %328 = vmatmul.mubr.msk.f32.vlgmr.msra.gmra.mrb[0].mxu0 %vm41_vm0, %v22_v2  ;;  %v30_v6 = vld [vmem:[%s440_s4 + $0x20] sm:$0xff] }
   0x5   :  { %334 = vmatprep.mubr.msk.f32.mxu1 %vm357_vm1, %v358_v8  ;;  %127 = vperm.xlu1 %350, %v28_v9   ;;  %v23_v20 = vld [vmem:[%s441_s2] sm:$0xff] }
   0x6   :  { %v24_v21 = vld [vmem:[%s442_s3] sm:$0xff] }
   0x7   :  { %339 = vmatprep.mubr.msk.f32.mxu0 %vm41_vm0, %v24_v21 }
   0x8   :  { %38 = vperm.xlu0 %349, %v27_v5  }
   0x9   :  { %213 = vperm.xlu1 %350, %v29_v10  }
   0xc   :  { %218 = vperm.xlu0 %349, %v30_v6  }
  0x83   :  { %v34_v11 = vpop.permute.xlu0 %33 }
  0x84   :  { %v128_v22 = vpop.permute.xlu1 %127 }
  0x87   :  { %v39_v12 = vpop.permute.xlu0 %38 }
  0x88   :  { %v214_v34 = vpop.permute.xlu1 %213 }
  0x8b   :  { %v219_v32 = vpop.permute.xlu0 %218 }
  0xd7   :  { %v329_v13 = vpop.f32.mrb[0].mxu0 }
  0xd8   :  { %v120_v14 = vadd.f32 %v329_v13, %v39_v12  ;;  %v114_v15 = vpop.f32.mrb[1].mxu0 }
  0xd9   :  { %v115_v16 = vadd.f32 %v114_v15, %v34_v11 }
  0xda   :  { %v124_v17 = vmax.f32 %v120_v14, 0.0 }
  0xdb   :  { %v123_v18 = vmax.f32 %v115_v16, 0.0 }
  0xdd   :  { %v343_v19 = vpack.c.bf16 %v124_v17, %v123_v18 }
  0xdf   :  { %344 = vmatpush3.bf16.msra.mxu1 %v343_v19 }
  0xe2   :  { %335 = vmatmul.mubr.msk.f32.vlgmr.msra.gmra.mrb[0].mxu1 %vm130_vm2, %v23_v20 }
 0x1b5   :  { %v200_v23 = vpop.f32.mrb[0].mxu1 }
 0x1b6   :  { %v201_v24 = vadd.f32 %v200_v23, %v128_v22  ;;  %v336_v25 = vpop.f32.mrb[1].mxu1 }
 0x1b8   :  { %v313_v26 = vmul.f32 -1.442695, %v201_v24 }
 0x1ba   :  { %351 = vpow2.f32 %v313_v26 }
 0x1c4   :  { %v352_v27 = vpop.eup %351 }
 0x1c5   :  { %v207_v28 = vadd.f32 1.0, %v352_v27 }
 0x1c7   :  { %353 = vrcp.f32 %v207_v28 }
 0x1d1   :  { %v354_v29 = vpop.eup %353 }
 0x1d2   :  { %v210_v30 = vmul.f32 %v354_v29, %v20_v0  ;;  %304 = vst [vmem:[%s443_s5 + $0x10] sm:$0xff] %v354_v29 }
 0x1d4   :  { %337 = vmatprep.subr.mxu0 %v210_v30  ;;  %305 = vst [vmem:[%s443_s5 + $0x18] sm:$0xff] %v210_v30 }
 0x1d5   :  { %338 = vmatpush3.msra.mxu0 %v210_v30 }
 0x1d6   :  { %340 = vmatmul.mubr.msk.f32.vlgmr.msra.gmra.mrb[2].mxu0 %vm41_vm0, %v25_v31 }
 0x2a9   :  { %v341_v33 = vpop.f32.mrb[2].mxu0 }
 0x2aa   :  { %v299_v35 = vadd.f32 %v341_v33, %v219_v32  ;;  %v293_v36 = vpop.f32.mrb[3].mxu0 }
 0x2ab   :  { %v294_v37 = vadd.f32 %v293_v36, %v214_v34 }
 0x2ac   :  { %303 = vst [vmem:[%s443_s5 + $0x8] sm:$0xff] %v299_v35 }
 0x2ad   :  { %302 = vst [vmem:[%s443_s5] sm:$0xff] %v294_v37 }

</bundles_post_ra>
